<compile_context>
chip_gen: v7x
topology: tpu7x:2x2x1
jax: 0.10.0
libtpu: 0.0.40
codegen_flags: <defaults>
</compile_context>

<pallas_src>
import functools

import jax
import jax.numpy as jnp
from jax import lax
from jax.experimental import pallas as pl
from jax.experimental.pallas import tpu as pltpu


def _exclaim_kernel(we_ref, e_ref, w1_ref, ew2_ref, wfc_ref, bfc_ref, out_ref,
                    *, scale, chunk):
    # we_ref : (TB, S, WE)  f32   word embeddings
    # e_ref  : (TB, S, 1)   int32 entity ids
    # w1_ref : (WE, H)      bf16  project1 weight
    # ew2_ref: (NE, H)      bf16  emb @ w2  (embedding fused with project2)
    # wfc_ref: (H, O_pad)   bf16  lane-padded fc weight
    # bfc_ref: (1, O_pad)   f32   lane-padded fc bias
    # out_ref: (TB, O_pad)  f32
    TB, S, WE = we_ref.shape
    H = w1_ref.shape[1]
    NE = ew2_ref.shape[0]
    n_chunks = TB // chunk

    # Small weights stay resident across the inner loop (hoisted loads).
    w1 = w1_ref[...]
    ew2 = ew2_ref[...]
    wfc = wfc_ref[...]
    bfc = bfc_ref[...]

    def body(c, carry):
        base = pl.multiple_of(c * chunk, chunk)
        we_c = we_ref[pl.ds(base, chunk), :, :]            # (chunk, S, WE) f32
        e_c = e_ref[pl.ds(base, chunk), :, :]              # (chunk, S, 1) int32

        # Fused embedding gather + projections:
        #   x = we @ w1 + one_hot(e) @ (emb @ w2)  ==  we @ w1 + emb[e] @ w2
        we2d = we_c.reshape(chunk * S, WE).astype(jnp.bfloat16)
        ids = lax.broadcasted_iota(jnp.int32, (chunk, S, NE), 2)
        onehot = (e_c == ids).astype(jnp.bfloat16).reshape(chunk * S, NE)
        x = (jnp.dot(we2d, w1, preferred_element_type=jnp.float32) +
             jnp.dot(onehot, ew2, preferred_element_type=jnp.float32))
        xb = x.reshape(chunk, S, H)                        # (chunk, S, H) f32
        xb_bf = xb.astype(jnp.bfloat16)

        # ScaledAttention(x, x, x): batched, transpose-free (contract on h).
        scores = jnp.einsum("bqh,bkh->bqk", xb_bf, xb_bf,
                            preferred_element_type=jnp.float32) * scale
        scores = scores - jnp.max(scores, axis=-1, keepdims=True)
        p = jnp.exp(scores)
        denom = jnp.sum(p, axis=-1, keepdims=True)
        # 1/S of the downstream sequence-mean is folded into the normalizer.
        attn = p * pl.reciprocal(denom * S, approx=True)
        ctx = jnp.einsum("bqk,bkh->bqh", attn.astype(jnp.bfloat16), xb_bf,
                         preferred_element_type=jnp.float32)  # (chunk, S, H)
        cv = jnp.sum(ctx, axis=1)                          # (chunk, H) == mean

        # fc: (chunk, H) @ (H, O_pad) + b  -> lane-dense unmasked store.
        logits = jnp.dot(cv.astype(jnp.bfloat16), wfc,
                         preferred_element_type=jnp.float32) + bfc
        out_ref[pl.ds(base, chunk), :] = logits.astype(out_ref.dtype)
        return carry

    # fori_loop (not a Python for) so vreg live ranges stay bounded per chunk.
    lax.fori_loop(0, n_chunks, body, 0, unroll=False)


def exclaim_forward(we, e, params, *, batch_tile=512, batch_chunk=16):
    """EXClaim.forward.  we: (B, S, we_size) f32, e: (B, S) int32."""
    emb, w1, w2, wfc, bfc = (params["emb"], params["w1"], params["w2"],
                             params["wfc"], params["bfc"])
    B, S, we_size = we.shape
    NE, ee_size = emb.shape
    H = w1.shape[1]
    O = wfc.shape[1]

    # Fold the embedding table through project2 once (tiny param-side matmul):
    # emb[e] @ w2 == one_hot(e) @ (emb @ w2).  Cast matmul weights to bf16.
    ew2 = jnp.dot(emb, w2).astype(jnp.bfloat16)            # (NE, H)
    w1_bf = w1.astype(jnp.bfloat16)

    # Lane-dense output: pad O up to a multiple of 128 for unmasked vst.
    O_PAD = ((O + 127) // 128) * 128
    wfc_p = jnp.zeros((H, O_PAD), jnp.bfloat16).at[:, :O].set(
        wfc.astype(jnp.bfloat16))
    bfc_p = jnp.zeros((1, O_PAD), jnp.float32).at[0, :O].set(bfc)

    # Batch tiling: TB rows per grid step (amortizes per-step pipeline
    # overhead, fills the MXU M dim).  Only the small we / e inputs are ever
    # padded; the big concatenated activation never exists in HBM.
    TB = B if B <= batch_tile else batch_tile              # batch_tile % 8 == 0
    Bp = ((B + TB - 1) // TB) * TB
    e = e.astype(jnp.int32)
    if Bp != B:
        we = jnp.pad(we, ((0, Bp - B), (0, 0), (0, 0)))
        e = jnp.pad(e, ((0, Bp - B), (0, 0)))
    e3 = e[:, :, None]                                     # (Bp, S, 1)
    grid = (Bp // TB,)

    # Inner chunk over batch rows (bounds vreg live ranges at large TB).
    chunk = min(batch_chunk, TB)
    if TB % chunk != 0:
        chunk = TB   # TODO(synk): pick a proper divisor for ragged tiles.

    # Generation-aware scoped-VMEM limit (v5e/v6e ~96 MiB, v7x ~48 MiB).
    try:
        vmem_cap = pltpu.get_tpu_info().vmem_capacity_bytes
        vmem_limit = min(int(vmem_cap * 3 // 4), 100 * 1024 * 1024)
    except Exception:
        vmem_limit = 32 * 1024 * 1024

    kernel = functools.partial(_exclaim_kernel,
                               scale=1.0 / (H ** 0.5), chunk=chunk)

    out = pl.pallas_call(
        kernel,
        out_shape=jax.ShapeDtypeStruct((Bp, O_PAD), jnp.float32),
        grid_spec=pltpu.PrefetchScalarGridSpec(
            num_scalar_prefetch=0,
            grid=grid,
            in_specs=[
                pl.BlockSpec((TB, S, we_size), lambda b: (b, 0, 0)),
                pl.BlockSpec((TB, S, 1), lambda b: (b, 0, 0)),
                pl.BlockSpec((we_size, H), lambda b: (0, 0)),
                pl.BlockSpec((NE, H), lambda b: (0, 0)),
                pl.BlockSpec((H, O_PAD), lambda b: (0, 0)),
                pl.BlockSpec((1, O_PAD), lambda b: (0, 0)),
            ],
            out_specs=pl.BlockSpec((TB, O_PAD), lambda b: (b, 0)),
        ),
        compiler_params=pltpu.CompilerParams(
            dimension_semantics=("parallel",),
            vmem_limit_bytes=vmem_limit),
    )(we, e3, w1_bf, ew2, wfc_p, bfc_p)

    return out[:B, :O]


def _reference_forward(we, e, params):
    """Pure-JAX f32 reference matching the PyTorch module semantics."""
    ee = jnp.take(params["emb"], e, axis=0)
    x = we @ params["w1"] + ee @ params["w2"]
    scale = 1.0 / (params["w1"].shape[1] ** 0.5)
    scores = jnp.einsum("bqh,bkh->bqk", x, x) * scale
    attn = jax.nn.softmax(scores, axis=-1)
    ctx = jnp.einsum("bqk,bkh->bqh", attn, x)
    cv = jnp.mean(ctx, axis=1)
    return cv @ params["wfc"] + params["bfc"]


if __name__ == "__main__":
    # Small shapes consistent with the module.
    B, S = 2, 8
    we_size, ee_size, no_entity, hidden_size, output_size = 16, 8, 10, 32, 4

    key = jax.random.PRNGKey(0)
    k_emb, k_w1, k_w2, k_wfc, k_bfc, k_we, k_e = jax.random.split(key, 7)

    params = {
        "emb": jax.random.normal(k_emb, (no_entity, ee_size), jnp.float32) * 0.1,
        "w1":  jax.random.normal(k_w1, (we_size, hidden_size), jnp.float32) * 0.1,
        "w2":  jax.random.normal(k_w2, (ee_size, hidden_size), jnp.float32) * 0.1,
        "wfc": jax.random.normal(k_wfc, (hidden_size, output_size), jnp.float32) * 0.1,
        "bfc": jax.random.normal(k_bfc, (output_size,), jnp.float32) * 0.1,
    }

    we = jax.random.normal(k_we, (B, S, we_size), jnp.float32)
    e = jax.random.randint(k_e, (B, S), 0, no_entity, dtype=jnp.int32)

    logits = exclaim_forward(we, e, params)
    jax.block_until_ready(logits)

    ref = _reference_forward(we, e, params)
    assert logits.shape == (B, output_size)
    # Tolerance accounts for bf16 MXU operands (f32 accumulation) and the
    # approx (EUP) softmax reciprocal; use f32 matmuls / approx=False where
    # tighter logits are required.
    assert jnp.allclose(logits, ref, atol=2e-2, rtol=2e-2), "mismatch vs reference"

    print("KERNEL_OK")
</pallas_src>

<mosaic_0001>
module attributes {stable_mosaic.version = 11 : i64} {
  func.func @_exclaim_kernel(%arg0: i32, %arg1: memref<2x8x16xf32, #tpu.memory_space<vmem>>, %arg2: memref<2x8x1xi32, #tpu.memory_space<vmem>>, %arg3: memref<16x32xbf16, #tpu.memory_space<vmem>>, %arg4: memref<10x32xbf16, #tpu.memory_space<vmem>>, %arg5: memref<32x128xbf16, #tpu.memory_space<vmem>>, %arg6: memref<1x128xf32, #tpu.memory_space<vmem>>, %arg7: memref<2x128xf32, #tpu.memory_space<vmem>>) attributes {dimension_semantics = [#tpu.dimension_semantics<parallel>], iteration_bounds = array<i64: 1>, scalar_prefetch = 0 : i64, scratch_operands = 0 : i64, tpu.core_type = #tpu.core_type<tc>, window_params = [{transform_indices = @transform_0, window_bounds = array<i64: 2, 8, 16>}, {transform_indices = @transform_1, window_bounds = array<i64: 2, 8, 1>}, {pipeline_mode = #tpu.pipeline_mode<synchronous>, transform_indices = @transform_2, window_bounds = array<i64: 16, 32>}, {pipeline_mode = #tpu.pipeline_mode<synchronous>, transform_indices = @transform_3, window_bounds = array<i64: 10, 32>}, {pipeline_mode = #tpu.pipeline_mode<synchronous>, transform_indices = @transform_4, window_bounds = array<i64: 32, 128>}, {pipeline_mode = #tpu.pipeline_mode<synchronous>, transform_indices = @transform_5, window_bounds = array<i64: 1, 128>}, {transform_indices = @transform_6, window_bounds = array<i64: 2, 128>}]} {
    %c0 = arith.constant 0 : index
    %c0_0 = arith.constant 0 : index
    %0 = vector.load %arg3[%c0, %c0_0] : memref<16x32xbf16, #tpu.memory_space<vmem>>, vector<16x32xbf16>
    %c0_1 = arith.constant 0 : index
    %c0_2 = arith.constant 0 : index
    %1 = vector.load %arg4[%c0_1, %c0_2] : memref<10x32xbf16, #tpu.memory_space<vmem>>, vector<10x32xbf16>
    %c0_3 = arith.constant 0 : index
    %c0_4 = arith.constant 0 : index
    %2 = vector.load %arg5[%c0_3, %c0_4] : memref<32x128xbf16, #tpu.memory_space<vmem>>, vector<32x128xbf16>
    %c0_5 = arith.constant 0 : index
    %c0_6 = arith.constant 0 : index
    %3 = vector.load %arg6[%c0_5, %c0_6] : memref<1x128xf32, #tpu.memory_space<vmem>>, vector<1x128xf32>
    %c0_i32 = arith.constant 0 : i32
    %c2_i32 = arith.constant 2 : i32
    %4 = arith.muli %c0_i32, %c2_i32 : i32
    %5 = tpu.assume_multiple %4, 2 : i32
    %6 = arith.index_cast %5 : i32 to index
    %c0_7 = arith.constant 0 : index
    %c0_8 = arith.constant 0 : index
    %7 = vector.load %arg1[%6, %c0_7, %c0_8] : memref<2x8x16xf32, #tpu.memory_space<vmem>>, vector<2x8x16xf32>
    %8 = arith.index_cast %5 : i32 to index
    %c0_9 = arith.constant 0 : index
    %c0_10 = arith.constant 0 : index
    %9 = vector.load %arg2[%8, %c0_9, %c0_10] : memref<2x8x1xi32, #tpu.memory_space<vmem>>, vector<2x8x1xi32>
    %10 = vector.shape_cast %7 : vector<2x8x16xf32> to vector<16x16xf32>
    %11 = arith.truncf %10 : vector<16x16xf32> to vector<16x16xbf16>
    %12 = tpu.iota {dimensions = array<i32: 2>} : vector<2x8x10xi32>
    %13 = vector.broadcast %9 : vector<2x8x1xi32> to vector<2x8x10xi32>
    %14 = arith.cmpi eq, %13, %12 : vector<2x8x10xi32>
    %15 = arith.extui %14 : vector<2x8x10xi1> to vector<2x8x10xi32>
    %16 = arith.sitofp %15 : vector<2x8x10xi32> to vector<2x8x10xf32>
    %17 = arith.truncf %16 : vector<2x8x10xf32> to vector<2x8x10xbf16>
    %18 = vector.shape_cast %17 : vector<2x8x10xbf16> to vector<16x10xbf16>
    %cst = arith.constant dense<0.000000e+00> : vector<16x32xf32>
    %19 = tpu.matmul %11, %0, %cst {dimension_numbers = #tpu.dot_dimension_numbers<[1], [0], [0], [1], [0, 0, 1, 1], [], []>} : vector<16x16xbf16>, vector<16x32xbf16>, vector<16x32xf32> -> vector<16x32xf32>
    %cst_11 = arith.constant dense<0.000000e+00> : vector<16x32xf32>
    %20 = tpu.matmul %18, %1, %cst_11 {dimension_numbers = #tpu.dot_dimension_numbers<[1], [0], [0], [1], [0, 0, 1, 1], [], []>} : vector<16x10xbf16>, vector<10x32xbf16>, vector<16x32xf32> -> vector<16x32xf32>
    %21 = arith.addf %19, %20 : vector<16x32xf32>
    %22 = vector.shape_cast %21 : vector<16x32xf32> to vector<2x8x32xf32>
    %23 = arith.truncf %22 : vector<2x8x32xf32> to vector<2x8x32xbf16>
    "tpu.trace_start"() <{level = 10 : i32, message = "bqh,bkh->bqk"}> : () -> ()
    %cst_12 = arith.constant dense<0.000000e+00> : vector<2x8x8xf32>
    %24 = tpu.matmul %23, %23, %cst_12 {dimension_numbers = #tpu.dot_dimension_numbers<[2], [2], [1], [1], [0, 0, 0, 1, 1, 1], [0], [0]>} : vector<2x8x32xbf16>, vector<2x8x32xbf16>, vector<2x8x8xf32> -> vector<2x8x8xf32>
    "tpu.trace_stop"() : () -> ()
    %cst_13 = arith.constant 0.176776692 : f32
    %25 = vector.broadcast %cst_13 : f32 to vector<2x8x8xf32>
    %26 = arith.mulf %24, %25 : vector<2x8x8xf32>
    %cst_14 = arith.constant dense<0xFF800000> : vector<2x8xf32>
    %27 = vector.multi_reduction <maximumf>, %26, %cst_14 [2] : vector<2x8x8xf32> to vector<2x8xf32>
    %28 = vector.shape_cast %27 : vector<2x8xf32> to vector<2x8x1xf32>
    %29 = vector.broadcast %28 : vector<2x8x1xf32> to vector<2x8x8xf32>
    %30 = arith.subf %26, %29 : vector<2x8x8xf32>
    %31 = math.exp %30 : vector<2x8x8xf32>
    %cst_15 = arith.constant dense<0.000000e+00> : vector<2x8xf32>
    %32 = vector.multi_reduction <add>, %31, %cst_15 [2] : vector<2x8x8xf32> to vector<2x8xf32>
    %33 = vector.shape_cast %32 : vector<2x8xf32> to vector<2x8x1xf32>
    %cst_16 = arith.constant 8.000000e+00 : f32
    %34 = vector.broadcast %cst_16 : f32 to vector<2x8x1xf32>
    %35 = arith.mulf %33, %34 : vector<2x8x1xf32>
    %36 = tpu.reciprocal %35 {approx = true} : vector<2x8x1xf32> -> vector<2x8x1xf32>
    %37 = vector.broadcast %36 : vector<2x8x1xf32> to vector<2x8x8xf32>
    %38 = arith.mulf %31, %37 : vector<2x8x8xf32>
    %39 = arith.truncf %38 : vector<2x8x8xf32> to vector<2x8x8xbf16>
    "tpu.trace_start"() <{level = 10 : i32, message = "bqk,bkh->bqh"}> : () -> ()
    %cst_17 = arith.constant dense<0.000000e+00> : vector<2x8x32xf32>
    %40 = tpu.matmul %39, %23, %cst_17 {dimension_numbers = #tpu.dot_dimension_numbers<[2], [1], [1], [2], [0, 0, 0, 1, 1, 2], [0], [0]>} : vector<2x8x8xbf16>, vector<2x8x32xbf16>, vector<2x8x32xf32> -> vector<2x8x32xf32>
    "tpu.trace_stop"() : () -> ()
    %cst_18 = arith.constant dense<0.000000e+00> : vector<2x32xf32>
    %41 = vector.multi_reduction <add>, %40, %cst_18 [1] : vector<2x8x32xf32> to vector<2x32xf32>
    %42 = arith.truncf %41 : vector<2x32xf32> to vector<2x32xbf16>
    %cst_19 = arith.constant dense<0.000000e+00> : vector<2x128xf32>
    %43 = tpu.matmul %42, %2, %cst_19 {dimension_numbers = #tpu.dot_dimension_numbers<[1], [0], [0], [1], [0, 0, 1, 1], [], []>} : vector<2x32xbf16>, vector<32x128xbf16>, vector<2x128xf32> -> vector<2x128xf32>
    %44 = vector.broadcast %3 : vector<1x128xf32> to vector<2x128xf32>
    %45 = arith.addf %43, %44 : vector<2x128xf32>
    %46 = arith.index_cast %5 : i32 to index
    %c0_20 = arith.constant 0 : index
    %47 = vector.load %arg7[%46, %c0_20] : memref<2x128xf32, #tpu.memory_space<vmem>>, vector<2x128xf32>
    tpu.vector_store %arg7[%46, %c0_20], %45 {strides = array<i32>} : memref<2x128xf32, #tpu.memory_space<vmem>>, vector<2x128xf32>,
    %c1_i32 = arith.constant 1 : i32
    return
  }
  func.func @transform_0(%arg0: i32) -> (i32, i32, i32) {
    %c0_i32 = arith.constant 0 : i32
    %c0_i32_0 = arith.constant 0 : i32
    %c0_i32_1 = arith.constant 0 : i32
    return %arg0, %c0_i32, %c0_i32_0 : i32, i32, i32
  }
  func.func @transform_1(%arg0: i32) -> (i32, i32, i32) {
    %c0_i32 = arith.constant 0 : i32
    %c0_i32_0 = arith.constant 0 : i32
    %c0_i32_1 = arith.constant 0 : i32
    return %arg0, %c0_i32, %c0_i32_0 : i32, i32, i32
  }
  func.func @transform_2(%arg0: i32) -> (i32, i32) {
    %c0_i32 = arith.constant 0 : i32
    %c0_i32_0 = arith.constant 0 : i32
    %c0_i32_1 = arith.constant 0 : i32
    return %c0_i32, %c0_i32_0 : i32, i32
  }
  func.func @transform_3(%arg0: i32) -> (i32, i32) {
    %c0_i32 = arith.constant 0 : i32
    %c0_i32_0 = arith.constant 0 : i32
    %c0_i32_1 = arith.constant 0 : i32
    return %c0_i32, %c0_i32_0 : i32, i32
  }
  func.func @transform_4(%arg0: i32) -> (i32, i32) {
    %c0_i32 = arith.constant 0 : i32
    %c0_i32_0 = arith.constant 0 : i32
    %c0_i32_1 = arith.constant 0 : i32
    return %c0_i32, %c0_i32_0 : i32, i32
  }
  func.func @transform_5(%arg0: i32) -> (i32, i32) {
    %c0_i32 = arith.constant 0 : i32
    %c0_i32_0 = arith.constant 0 : i32
    %c0_i32_1 = arith.constant 0 : i32
    return %c0_i32, %c0_i32_0 : i32, i32
  }
  func.func @transform_6(%arg0: i32) -> (i32, i32) {
    %c0_i32 = arith.constant 0 : i32
    %c0_i32_0 = arith.constant 0 : i32
    return %arg0, %c0_i32 : i32, i32
  }
}

</mosaic_0001>

<bundles_post_ra>
// kernel: tpu_custom_call.1
= control target key start
LH: loop header
LB: loop body
LE: loop exit
PB: predicated region body
PF: predicated region fallthrough
CT: control target
= control target key end

     0   :  { %11 = vsyncpa [#allocation3], 0  ;;  %s817_s0 = inlined_call_operand.vmem [shape: f32[2,8,16], index: 0, kind: input, shape index: {}]   ;;  %s818_s1 = inlined_call_operand.vmem [shape: s32[2,8,1], index: 1, kind: input, shape index: {}]   ;;  %s819_s2 = inlined_call_operand.hbm [shape: bf16[16,32], index: 2, kind: input, shape index: {}]   ;;  %s820_s3 = inlined_call_operand.hbm [shape: bf16[10,32], index: 3, kind: input, shape index: {}]   ;;  %s821_s4 = inlined_call_operand.vmem [shape: bf16[32,128], index: 4, kind: input, shape index: {}]   ;;  %s822_s5 = inlined_call_operand.vmem [shape: f32[1,128], index: 5, kind: input, shape index: {}]   ;;  %s823_s6 = inlined_call_operand.hbm [shape: f32[2,128], index: 6, kind: output, shape index: {}]  }
   0x1   :  { %12 = vsyncpa [#allocation6], 0 }
   0x2   :  { %13 = vsyncpa [#allocation4], 0  ;;  %s678_s21 = smov [#allocation2]   ;;  %s606_s25 = scalar_lea.hbm %s819_s2, 128 }
   0x3   :  { %s23_s22 = sshll.u32 %s678_s21, 4  ;;  %p607_p0 = scmp.ne.s32.totalorder %s819_s2, %s606_s25  ;;  %s24_s22 = int_to_ptr.vmem [resolvable:$true] %s23_s22 }
   0x4   :  { %p610_p1 = scmp.lt.u32.totalorder %s606_s25, %s819_s2 }
   0x6   :  { %p612_p2 = pnand %p610_p1, %p607_p0 }
   0x8   :  { %615 = shalt.err (!%p612_p2)
}
   0x9   :  { %s616_s30 = scalar_lea.vmem %s24_s22, 128  ;;  %p621_p4 = scmp.lt.s32.totalorder %s24_s22, %s24_s22 }
   0xa   :  { %p617_p3 = scmp.ne.s32.totalorder %s24_s22, %s616_s30  ;;  %p622_p5 = scmp.lt.s32.totalorder %s616_s30, %s616_s30 }
   0xc   :  { %p623_p6 = por %p622_p5, %p621_p4 }
   0xe   :  { %p624_p7 = pnand %p623_p6, %p617_p3 }
  0x10   :  { %627 = shalt.err (!%p624_p7)
}
  0x11   :  { %s679_s7 = smov 64   ;;  %s680_s8 = smov 4  }
  0x12   :  { %29 = dma.hbm_to_vmem [thread:$0]  %s819_s2, 128, %s24_s22, [#allocation3], %s679_s7, %s679_s7, %s680_s8  }
  0x13   :  { %s681_s11 = smov [#allocation5]   ;;  %s628_s15 = scalar_lea.hbm %s820_s3, 128 }
  0x14   :  { %s35_s12 = sshll.u32 %s681_s11, 4  ;;  %p629_p8 = scmp.ne.s32.totalorder %s820_s3, %s628_s15  ;;  %s36_s12 = int_to_ptr.vmem [resolvable:$true] %s35_s12 }
  0x15   :  { %p632_p9 = scmp.lt.u32.totalorder %s628_s15, %s820_s3 }
  0x17   :  { %p634_p10 = pnand %p632_p9, %p629_p8 }
  0x19   :  { %637 = shalt.err (!%p634_p10)
}
  0x1a   :  { %s638_s20 = scalar_lea.vmem %s36_s12, 128  ;;  %p643_p12 = scmp.lt.s32.totalorder %s36_s12, %s36_s12 }
  0x1b   :  { %p639_p11 = scmp.ne.s32.totalorder %s36_s12, %s638_s20  ;;  %p644_p13 = scmp.lt.s32.totalorder %s638_s20, %s638_s20 }
  0x1d   :  { %p645_p0 = por %p644_p13, %p643_p12 }
  0x1f   :  { %p646_p1 = pnand %p645_p0, %p639_p11 }
  0x21   :  { %649 = shalt.err (!%p646_p1)
}
  0x22   :  { %41 = dma.hbm_to_vmem [thread:$0]  %s820_s3, 128, %s36_s12, [#allocation6], %s679_s7, %s679_s7, %s680_s8  }
  0x23   :  { %672 = dma.done.wait [#allocation3], 128  }
  0x24   :  { %673 = vsyncadd [#allocation3], 4294967168 }
  0x25   :  { %674 = dma.done.wait [#allocation6], 128  }
  0x26   :  { %675 = vsyncadd [#allocation6], 4294967168  ;;  %v682_v0 = vmov 0   ;;  %v683_v1 = vmov 0.0   ;;  %v67_v2 = vld [vmem:[%s818_s1] sm:$0xff]  ;;  %v68_v3 = vld [vmem:[%s818_s1 + $0x8] sm:$0xff]  ;;  %v70_v6 = vlaneseq }
  0x27   :  { %593 = vset.pattern.permute.xlu0 %v682_v0  ;;  %537 = vmatprep.subr.bf16.mxu0 %v683_v1  ;;  %v594_v4 = vld [vmem:[#allocation5] sm:$0x1f]   ;;  %vm100_vm0 = vcmask 1044480   ;;  %vm684_vm1 = vmmov 0   ;;  %vm96_vm4 = vcmask 80896   ;;  %v595_v12 = vld [vmem:[#allocation2] sm:$0xff]  }
  0x28   :  { %549 = vmatprep.subr.bf16.mxu1 %v683_v1  ;;  %73 = vperm.xlu0 %593, %v67_v2   ;;  %v102_v5 = vsel %vm100_vm0, %v594_v4, 0  ;;  %v71_v7 = vand.u32 127, %v70_v6  ;;  %v64_v14 = vld [vmem:[%s817_s0] sm:$0xff]  ;;  %v65_v15 = vld [vmem:[%s817_s0 + $0x8] sm:$0xff]  ;;  %vm151_vm5 = vcmask 130048   ;;  %vm198_vm6 = vcmask 261120  }
  0x29   :  { %538 = vmatpush3.bf16.msra.mxu0 %v102_v5  ;;  %539 = vmatprep.mubr.msk.bf16.mxu0 %vm684_vm1, %v683_v1  ;;  %v69_v16 = vpack.c.bf16 %v65_v15, %v64_v14  ;;  %vm317_vm7 = vcmask 1043456   ;;  %vm287_vm8 = vcmask 64512   ;;  %v596_v59 = vld [vmem:[%s821_s4] sm:$0xff]   ;;  %v597_v60 = vld [vmem:[%s821_s4 + $0x8] sm:$0xff]   ;;  %vm431_vm9 = vcmask 1041409   ;;  %s685_s8 = smov [#allocation7]  }
  0x2a   :  { %543 = vmatprep.subr.bf16.mxu0 %v683_v1  ;;  %551 = vmatprep.mubr.msk.bf16.mxu1 %vm684_vm1, %v683_v1  ;;  %s496_s9 = sshll.u32 %s685_s8, 4  ;;  %s497_s9 = int_to_ptr.vmem [resolvable:$true] %s496_s9 }
  0x2b   :  { %s650_s10 = scalar_lea.vmem %s497_s9, 32  ;;  %p655_p3 = scmp.lt.s32.totalorder %s497_s9, %s497_s9 }
  0x2c   :  { %76 = vperm.xlu0 %593, %v68_v3   ;;  %p651_p2 = scmp.ne.s32.totalorder %s497_s9, %s650_s10  ;;  %p656_p4 = scmp.lt.s32.totalorder %s650_s10, %s650_s10 }
  0x2e   :  { %p657_p5 = por %p656_p4, %p655_p3 }
  0x30   :  { %p658_p6 = pnand %p657_p5, %p651_p2 }
  0xa7   :  { %v74_v8 = vpop.permute.xlu0 %73 }
  0xa8   :  { %vm78_vm2 = vcmp.eq.s32.totalorder %v74_v8, %v71_v7 }
  0xa9   :  { %v506_v10 = vsel %vm78_vm2, 1.0, %v683_v1 }
  0xab   :  { %v77_v9 = vpop.permute.xlu0 %76 }
  0xac   :  { %vm79_vm3 = vcmp.eq.s32.totalorder %v77_v9, %v71_v7 }
  0xad   :  { %v507_v11 = vsel %vm79_vm3, 1.0, %v683_v1 }
  0xae   :  { %v521_v13 = vpack.c.bf16 %v507_v11, %v506_v10 }
  0xb0   :  { %540 = vmatmul.mubr.msk.bf16.vlgmr.msra.gmra.mrb[0].mxu0 %vm96_vm4, %v521_v13 }
  0xb1   :  { %544 = vmatpush3.bf16.msra.mxu0 %v595_v12  ;;  %545 = vmatprep.mubr.msk.bf16.mxu0 %vm684_vm1, %v683_v1 }
  0xb2   :  { %561 = vmatprep.subr.bf16.mxu0 %v683_v1 }
  0xbc   :  { %546 = vmatmul.mubr.msk.bf16.vlgmr.msra.gmra.mrb[0].mxu0 %vm151_vm5, %v69_v16 }
  0xbd   :  { %563 = vmatprep.mubr.msk.bf16.mxu0 %vm684_vm1, %v683_v1 }
 0x18f   :  { %v189_v17 = vpop.f32.mrb[0].mxu0 }
 0x190   :  { %v196_v18 = vpack.c.bf16 %v189_v17, %v189_v17  ;;  %v547_v19 = vpop.f32.mrb[1].mxu0 }
 0x191   :  { %v192_v20 = vpop.f32.mrb[2].mxu0 }
 0x192   :  { %v548_v21 = vpop.f32.mrb[3].mxu0  ;;  %v200_v22 = vsel %vm198_vm6, %v196_v18, 0  ;;  %v318_v23 = vsel %vm317_vm7, %v196_v18, 0  ;;  %v197_v24 = vpack.c.bf16 %v192_v20, %v192_v20 }
 0x193   :  { %550 = vmatpush3.bf16.xpose.msra.mxu1 %v200_v22  ;;  %562 = vmatpush3.bf16.msra.mxu0 %v318_v23 }
 0x194   :  { %555 = vmatprep.subr.bf16.mxu1 %v683_v1  ;;  %573 = vmatprep.subr.bf16.mxu0 %v683_v1  ;;  %v243_v25 = vsel %vm198_vm6, %v197_v24, 0  ;;  %v363_v26 = vsel %vm317_vm7, %v197_v24, 0 }
 0x19a   :  { %552 = vmatmul.mubr.msk.bf16.vlgmr.msra.gmra.mrb[0].mxu1 %vm198_vm6, %v196_v18 }
 0x19b   :  { %556 = vmatpush3.bf16.xpose.msra.mxu1 %v243_v25  ;;  %557 = vmatprep.mubr.msk.bf16.mxu1 %vm684_vm1, %v683_v1  ;;  %v517_v25 = vld [vmem:[%s822_s5] ss:$0 sm:$0xff] }
 0x19c   :  { %567 = vmatprep.subr.bf16.mxu1 %v683_v1 }
 0x1a2   :  { %558 = vmatmul.mubr.msk.bf16.vlgmr.msra.gmra.mrb[4].mxu1 %vm198_vm6, %v197_v24 }
 0x1a3   :  { %568 = vmatpush3.bf16.msra.mxu1 %v363_v26  ;;  %569 = vmatprep.mubr.msk.bf16.mxu1 %vm684_vm1, %v683_v1 }
 0x26d   :  { %v236_v27 = vpop.f32.mrb[0].mxu1 }
 0x26e   :  { %v285_v28 = vmul.f32 0.17677669, %v236_v27  ;;  %v553_v29 = vpop.f32.mrb[1].mxu1 }
 0x26f   :  { %v239_v30 = vpop.f32.mrb[2].mxu1 }
 0x270   :  { %v554_v31 = vpop.f32.mrb[3].mxu1  ;;  %v288_v32 = vsel %vm287_vm8, %v285_v28, -inf }
 0x271   :  { %289 = vmax.xlane.f32.xlu1 %v288_v32 }
 0x275   :  { %v279_v33 = vpop.f32.mrb[4].mxu1 }
 0x276   :  { %v286_v34 = vmul.f32 0.17677669, %v279_v33  ;;  %v559_v35 = vpop.f32.mrb[5].mxu1 }
 0x277   :  { %v282_v36 = vpop.f32.mrb[6].mxu1 }
 0x278   :  { %v560_v37 = vpop.f32.mrb[7].mxu1  ;;  %v291_v38 = vsel %vm287_vm8, %v286_v34, -inf }
 0x279   :  { %292 = vmax.xlane.f32.xlu1 %v291_v38 }
 0x2fe   :  { %v290_v39 = vpop.xlane.xlu1 %289 }
 0x2ff   :  { %v294_v40 = vsub.f32 %v285_v28, %v290_v39 }
 0x301   :  { %v296_v41 = vmul.f32 1.442695, %v294_v40 }
 0x303   :  { %598 = vpow2.f32 %v296_v41 }
 0x306   :  { %v293_v42 = vpop.xlane.xlu1 %292 }
 0x307   :  { %v295_v43 = vsub.f32 %v286_v34, %v293_v42 }
 0x309   :  { %v298_v44 = vmul.f32 1.442695, %v295_v43 }
 0x30b   :  { %600 = vpow2.f32 %v298_v44 }
 0x30d   :  { %v599_v45 = vpop.eup %598 }
 0x30e   :  { %v300_v46 = vsel %vm287_vm8, %v599_v45, 0.0 }
 0x30f   :  { %301 = vadd.xlane.f32.xlu0 %v300_v46 }
 0x315   :  { %v601_v47 = vpop.eup %600 }
 0x316   :  { %v303_v48 = vsel %vm287_vm8, %v601_v47, 0.0 }
 0x317   :  { %304 = vadd.xlane.f32.xlu1 %v303_v48 }
 0x39c   :  { %v302_v49 = vpop.xlane.xlu0 %301 }
 0x39d   :  { %v306_v50 = vmul.f32 8.0, %v302_v49 }
 0x39f   :  { %602 = vrcp.f32 %v306_v50 }
 0x3a4   :  { %v305_v51 = vpop.xlane.xlu1 %304 }
 0x3a5   :  { %v307_v52 = vmul.f32 8.0, %v305_v51 }
 0x3a7   :  { %604 = vrcp.f32 %v307_v52 }
 0x3a9   :  { %v603_v53 = vpop.eup %602 }
 0x3aa   :  { %v310_v54 = vmul.f32 %v603_v53, %v599_v45 }
 0x3ac   :  { %v312_v55 = vpack.c.bf16 %v310_v54, %v310_v54 }
 0x3ae   :  { %564 = vmatmul.mubr.msk.bf16.vlgmr.msra.gmra.mrb[4].mxu0 %vm287_vm8, %v312_v55 }
 0x3af   :  { %577 = vmatprep.mubr.msk.bf16.mxu0 %vm684_vm1, %v683_v1  ;;  %574 = vmatpush3.bf16.msra.mxu0 %v596_v59 }
 0x3b0   :  { %575 = vmatprep.subr.bf16.mxu0 %v683_v1 }
 0x3b1   :  { %v605_v56 = vpop.eup %604 }
 0x3b2   :  { %v311_v57 = vmul.f32 %v605_v56, %v601_v47 }
 0x3b3   :  { %576 = vmatpush3.bf16.msra.mxu0 %v597_v60 }
 0x3b4   :  { %v313_v58 = vpack.c.bf16 %v311_v57, %v311_v57 }
 0x3b6   :  { %570 = vmatmul.mubr.msk.bf16.vlgmr.msra.gmra.mrb[8].mxu1 %vm287_vm8, %v313_v58 }
 0x481   :  { %v354_v61 = vpop.f32.mrb[4].mxu0 }
 0x482   :  { %v405_v62 = vsel %vm198_vm6, %v354_v61, 0.0  ;;  %v565_v63 = vpop.f32.mrb[5].mxu0 }
 0x483   :  { %v406_v0 = vrot.slane %v405_v62, 4  ;;  %v357_v2 = vpop.f32.mrb[6].mxu0 }
 0x484   :  { %v566_v3 = vpop.f32.mrb[7].mxu0 }
 0x485   :  { %v407_v4 = vadd.f32 %v406_v0, %v405_v62 }
 0x487   :  { %v408_v5 = vrot.slane %v407_v4, 2 }
 0x489   :  { %v409_v6 = vadd.f32 %v408_v5, %v407_v4  ;;  %v399_v7 = vpop.f32.mrb[8].mxu1 }
 0x48a   :  { %v412_v8 = vsel %vm198_vm6, %v399_v7, 0.0  ;;  %v571_v9 = vpop.f32.mrb[9].mxu1 }
 0x48b   :  { %v413_v1 = vrot.slane %v412_v8, 4  ;;  %v402_v10 = vpop.f32.mrb[10].mxu1  ;;  %v410_v12 = vrot.slane %v409_v6, 1 }
 0x48c   :  { %v572_v11 = vpop.f32.mrb[11].mxu1 }
 0x48d   :  { %v414_v13 = vadd.f32 %v413_v1, %v412_v8  ;;  %v411_v15 = vadd.f32 %v410_v12, %v409_v6 }
 0x48f   :  { %v415_v14 = vrot.slane %v414_v13, 2  ;;  %v419_v18 = vpack.c.bf16 %v411_v15, %v411_v15 }
 0x491   :  { %v416_v16 = vadd.f32 %v415_v14, %v414_v13  ;;  %v429_v21 = vunpack.c.l.b16 %v419_v18 }
 0x493   :  { %v417_v17 = vrot.slane %v416_v16, 1 }
 0x495   :  { %v418_v19 = vadd.f32 %v417_v17, %v416_v16 }
 0x497   :  { %v420_v20 = vpack.c.bf16 %v418_v19, %v418_v19 }
 0x499   :  { %v430_v22 = vunpack.c.l.b16 %v420_v20 }
 0x49b   :  { %v432_v23 = vsel %vm431_vm9, %v430_v22, %v429_v21 }
 0x49c   :  { %v433_v24 = vpack.c.b16 %v432_v23, %v432_v23 }
 0x49e   :  { %578 = vmatmul.mubr.msk.bf16.vlgmr.msra.gmra.mrb[8].mxu0 %vm198_vm6, %v433_v24 }
 0x571   :  { %v483_v26 = vpop.f32.mrb[8].mxu0 }
 0x572   :  { %v484_v27 = vadd.f32 %v517_v25, %v483_v26  ;;  %v579_v28 = vpop.f32.mrb[9].mxu0 }
 0x573   :  { %v486_v29 = vpop.f32.mrb[10].mxu0 }
 0x574   :  { %489 = vst [vmem:[#allocation7] sm:$0x3] %v484_v27  ;;  %v580_v30 = vpop.f32.mrb[11].mxu0 }
 0x575   :  { %661 = shalt.err (!%p658_p6)
}
 0x576   :  { %s662_s5 = scalar_lea.hbm %s823_s6, 32 }
 0x577   :  { %p663_p7 = scmp.ne.s32.totalorder %s823_s6, %s662_s5  ;;  %p666_p8 = scmp.lt.u32.totalorder %s662_s5, %s823_s6 }
 0x579   :  { %p668_p9 = pnand %p666_p8, %p663_p7 }
 0x57b   :  { %671 = shalt.err (!%p668_p9)
}
 0x57c   :  { %499 = dma.vmem_to_hbm [thread:$0]  %s497_s9, 32, %s823_s6, [#allocation4]  }
 0x57d   :  { %676 = dma.done.wait [#allocation4], 32  }
 0x57e   :  { %677 = vsyncadd [#allocation4], 4294967264 }
 0x57f   :  { %503 = vsyncpa [#allocation3], 1 }
 0x580   :  { %504 = vsyncpa [#allocation6], 1 }
 0x581   :  { %505 = vsyncpa [#allocation4], 1 }

</bundles_post_ra>
